<compile_context>
chip_gen: v7x
topology: tpu7x:2x2x1
jax: 0.10.0
libtpu: 0.0.40
codegen_flags: <defaults>
</compile_context>

<pallas_src>
import numpy as np
import jax
import jax.numpy as jnp
from jax.experimental import pallas as pl
from jax.experimental.pallas import tpu as pltpu


# ----------------------------------------------------------------------------
# PyTorch-module helpers (mirrored in JAX)
# ----------------------------------------------------------------------------
def generate_base_kernel_size(kernel_size, N):
    """Mirror of the PyTorch helper (kernel sizes for the base slicer)."""
    c, d = kernel_size[0], kernel_size[1]
    sizes = [(1, c, int(d / 2 + 1), int(d / 2 + 1))]
    for i in range(2, N):
        sizes.append((1, 1, int(d * 2 ** (-i) + 1), int(d * 2 ** (-i) + 1)))
    sizes.append((1, 1, int(d / 2 ** (N - 1)), int(d / 2 ** (N - 1))))
    return sizes


def sample_unit_kernel(key, size):
    """torch.rand(size) / sum  ->  jax.random.uniform / sum (deterministic)."""
    k = jax.random.uniform(key, size, dtype=jnp.float32)
    return k / jnp.sum(k)


# ----------------------------------------------------------------------------
# Effective-weight composition (plain JAX; kernels are tiny, L is small).
# Cached automatically when the forward is wrapped in jax.jit.
# ----------------------------------------------------------------------------
def _compose_full(a_nchw, b_oihw, groups):
    """Full 2-D convolution of each (batch, channel) plane of `a` with the
    per-group kernel in `b` (OIHW with I=1).  Output spatial = Ha + Hb - 1."""
    kb = b_oihw.shape[-1]
    b_flip = b_oihw[:, :, ::-1, ::-1]          # flip: cross-correlation -> true conv
    return jax.lax.conv_general_dilated(
        a_nchw, b_flip, window_strides=(1, 1),
        padding=[(kb - 1, kb - 1), (kb - 1, kb - 1)],
        dimension_numbers=("NCHW", "OIHW", "NCHW"),
        feature_group_count=groups)


def effective_weights(ws):
    """Compose the slicer chain into one (L, C, D, D) effective kernel.

    ws[0]  : (L, C, K1, K1)   first-stage weights (C input channels)
    ws[i>0]: (L, 1, Ki, Ki)   later single-channel stages
    """
    L = ws[0].shape[0]
    a = jnp.transpose(ws[0], (1, 0, 2, 3))     # (C, L, K1, K1): L in channel dim
    for w in ws[1:]:
        a = _compose_full(a, w, groups=L)      # grouped: slicer l uses w[l]
    return jnp.transpose(a, (1, 0, 2, 3))      # (L, C, D, D)


# ----------------------------------------------------------------------------
# Pallas tiled matmul: out(M, N) = x(M, K) @ w(K, N), f32 accumulate in-place.
# ----------------------------------------------------------------------------
def _make_matmul_kernel(tk, slice_w):
    def kernel(x_ref, w_ref, o_ref):
        k = pl.program_id(2)

        @pl.when(k == 0)
        def _():
            o_ref[...] = jnp.zeros_like(o_ref)

        if slice_w:
            # Weight block holds the full (Kp, tn) slab (VMEM-resident across
            # the whole grid); pick the current K chunk out of it.
            start = pl.multiple_of(k * tk, tk)
            w = w_ref[pl.ds(start, tk), :]
        else:
            w = w_ref[...]

        # Output tile stays resident across the (innermost, "arbitrary") k
        # axis, so we accumulate directly into it -- no scratch, no copy.
        o_ref[...] += jnp.dot(x_ref[...], w, preferred_element_type=jnp.float32)

    return kernel


def _round_up(v, m):
    return (v + m - 1) // m * m


def _largest_divisor(n, cap, align):
    """Largest t <= cap with t % align == 0 and n % t == 0 (n % align == 0)."""
    best = align
    t = align
    cap = min(cap, n)
    while t <= cap:
        if n % t == 0:
            best = t
        t += align
    return best


# ----------------------------------------------------------------------------
# Forward of Conv_Sliced_Wasserstein(type='base')
# ----------------------------------------------------------------------------
def conv_sliced_wasserstein_base(x, weights):
    """x: (B, C, D, D); weights: [(L,C,K1,K1), (L,1,K2,K2), ..., (L,1,KN,KN)]."""
    B, C, D, _ = x.shape
    L = weights[0].shape[0]
    ksum = sum(w.shape[-1] for w in weights)
    assert D - ksum + len(weights) == 1, "base slicer must reduce spatial dims to 1x1"

    weff = effective_weights(weights)                              # (L, C, D, D)
    Kdim = C * D * D
    xf = x.reshape(B, Kdim).astype(jnp.float32)                    # (B, K)
    wf = jnp.transpose(weff.reshape(L, Kdim)).astype(jnp.float32)  # (K, L)

    # --- M: only a tiny (<= 7 row) tail pad so the sublane dim is aligned ---
    Mp = _round_up(B, 8)
    if Mp != B:
        xf = jnp.pad(xf, ((0, Mp - B), (0, 0)))
    tm = _largest_divisor(Mp, 512, 8)

    # --- N (slicers): lane dim; pad only the tiny weight operand to 128 ---
    tn = 128
    Np = _round_up(L, tn)

    # --- K: never copy x along K.  Take the whole K in one block, or an exact
    #     128-aligned divisor of K; only zero-pad (exact for the sum) if
    #     neither works (keeps VMEM OOB garbage out of the accumulation). ---
    K_FULL_CAP, TK_CAP = 4096, 2048
    if Kdim <= K_FULL_CAP:
        Kp, tk = Kdim, Kdim
    elif Kdim % 128 == 0:
        Kp, tk = Kdim, _largest_divisor(Kdim, TK_CAP, 128)
    else:
        Kp = _round_up(Kdim, 128)
        tk = _largest_divisor(Kp, TK_CAP, 128)
        xf = jnp.pad(xf, ((0, 0), (0, Kp - Kdim)))

    wp = jnp.zeros((Kp, Np), jnp.float32).at[:Kdim, :L].set(wf)    # tiny operand

    kgrid = Kp // tk
    # Keep the whole (Kp, tn) weight slab VMEM-resident (index map constant in
    # i and k => streamed from HBM exactly once) when it fits comfortably.
    w_resident = 2 * Kp * tn * 4 <= (12 << 20)
    slice_w = w_resident and kgrid > 1
    w_block = (Kp, tn) if w_resident else (tk, tn)
    w_index = (lambda i, j, k: (0, j)) if w_resident else (lambda i, j, k: (k, j))

    # TODO(synk): for tiny problems (e.g. the demo shape) a plain jnp.dot would
    #             beat the pallas_call fixed overhead; kept Pallas unconditionally.
    # TODO(synk): on v7x with very small B the (i, j) parallel axes degenerate
    #             to extent 1 and one TensorCore idles; a split-K partial-sum
    #             variant would use both cores.
    out = pl.pallas_call(
        _make_matmul_kernel(tk, slice_w),
        out_shape=jax.ShapeDtypeStruct((Mp, Np), jnp.float32),
        grid_spec=pltpu.PrefetchScalarGridSpec(
            num_scalar_prefetch=0,
            grid=(Mp // tm, Np // tn, kgrid),
            in_specs=[
                pl.BlockSpec((tm, tk), lambda i, j, k: (i, k)),
                pl.BlockSpec(w_block, w_index),
            ],
            out_specs=pl.BlockSpec((tm, tn), lambda i, j, k: (i, j)),
        ),
        compiler_params=pltpu.CompilerParams(
            dimension_semantics=("parallel", "parallel", "arbitrary"),
            vmem_limit_bytes=48 << 20,   # headroom on v7x (64 MiB physical)
        ),
    )(xf, wp)

    # Glue: torch.cat(out, dim=1).squeeze()  ((B,1,1,1) x L -> (B,L,1,1) -> squeeze)
    return jnp.squeeze(out[:B, :L])


# ----------------------------------------------------------------------------
# Pure-JAX reference (per-slicer conv chain), for the correctness check
# ----------------------------------------------------------------------------
def _reference_forward(x, weights):
    dn = ("NCHW", "OIHW", "NCHW")
    L = weights[0].shape[0]
    outs = []
    for l in range(L):
        y = x
        for w in weights:
            y = jax.lax.conv_general_dilated(y, w[l:l + 1], (1, 1), "VALID",
                                             dimension_numbers=dn)
        outs.append(y)
    return jnp.squeeze(jnp.concatenate(outs, axis=1))


# TODO(synk): only the 'base' slicer type is implemented; the 'stride' and
#             'dilatation' variants of Conv_Sliced_Wasserstein are not ported.

if __name__ == "__main__":
    # Small shapes consistent with the module: input_size=(C, D, D), N=3, L=2.
    B, C, D = 2, 4, 16
    N, L = 3, 2

    key = jax.random.PRNGKey(0)
    kx, kw = jax.random.split(key)
    x = jax.random.uniform(kx, (B, C, D, D), dtype=jnp.float32)

    sizes = generate_base_kernel_size((C, D, D), N)  # [(1,C,9,9), (1,1,5,5), (1,1,4,4)]
    keys = jax.random.split(kw, L * N)
    weights = []
    for n in range(N):
        weights.append(jnp.stack(
            [sample_unit_kernel(keys[l * N + n], sizes[n])[0] for l in range(L)]))
    # weights[0]: (L, C, 9, 9), weights[1]: (L, 1, 5, 5), weights[2]: (L, 1, 4, 4)

    fwd = jax.jit(conv_sliced_wasserstein_base)
    out = jax.block_until_ready(fwd(x, weights))

    ref = _reference_forward(x, weights)
    assert out.shape == ref.shape == (B, L)
    np.testing.assert_allclose(np.asarray(out), np.asarray(ref), rtol=1e-4, atol=1e-5)
    print("KERNEL_OK")
</pallas_src>

<mosaic_0001>
module attributes {stable_mosaic.version = 11 : i64} {
  func.func @kernel(%arg0: i32, %arg1: i32, %arg2: i32, %arg3: memref<8x1024xf32, #tpu.memory_space<vmem>>, %arg4: memref<1024x128xf32, #tpu.memory_space<vmem>>, %arg5: memref<8x128xf32, #tpu.memory_space<vmem>>) attributes {dimension_semantics = [#tpu.dimension_semantics<parallel>, #tpu.dimension_semantics<parallel>, #tpu.dimension_semantics<arbitrary>], iteration_bounds = array<i64: 1, 1, 1>, scalar_prefetch = 0 : i64, scratch_operands = 0 : i64, tpu.core_type = #tpu.core_type<tc>, window_params = [{transform_indices = @transform_0, window_bounds = array<i64: 8, 1024>}, {transform_indices = @transform_1, window_bounds = array<i64: 1024, 128>}, {transform_indices = @transform_2, window_bounds = array<i64: 8, 128>}]} {
    %c0_i32 = arith.constant 0 : i32
    %0 = arith.cmpi eq, %arg2, %c0_i32 : i32
    %1 = arith.extui %0 : i1 to i32
    %c0_i32_0 = arith.constant 0 : i32
    %2 = arith.cmpi ne, %1, %c0_i32_0 : i32
    scf.if %2 {
      %cst_8 = arith.constant 0.000000e+00 : f32
      %9 = vector.broadcast %cst_8 : f32 to vector<8x128xf32>
      %c0_9 = arith.constant 0 : index
      %c0_10 = arith.constant 0 : index
      %10 = vector.load %arg5[%c0_9, %c0_10] : memref<8x128xf32, #tpu.memory_space<vmem>>, vector<8x128xf32>
      tpu.vector_store %arg5[%c0_9, %c0_10], %9 {strides = array<i32>} : memref<8x128xf32, #tpu.memory_space<vmem>>, vector<8x128xf32>,
    } else {
    }
    %c0 = arith.constant 0 : index
    %c0_1 = arith.constant 0 : index
    %3 = vector.load %arg4[%c0, %c0_1] : memref<1024x128xf32, #tpu.memory_space<vmem>>, vector<1024x128xf32>
    %c0_2 = arith.constant 0 : index
    %c0_3 = arith.constant 0 : index
    %4 = vector.load %arg5[%c0_2, %c0_3] : memref<8x128xf32, #tpu.memory_space<vmem>>, vector<8x128xf32>
    %c0_4 = arith.constant 0 : index
    %c0_5 = arith.constant 0 : index
    %5 = vector.load %arg3[%c0_4, %c0_5] : memref<8x1024xf32, #tpu.memory_space<vmem>>, vector<8x1024xf32>
    %cst = arith.constant dense<0.000000e+00> : vector<8x128xf32>
    %6 = tpu.matmul %5, %3, %cst {dimension_numbers = #tpu.dot_dimension_numbers<[1], [0], [0], [1], [0, 0, 1, 1], [], []>} : vector<8x1024xf32>, vector<1024x128xf32>, vector<8x128xf32> -> vector<8x128xf32>
    %7 = arith.addf %4, %6 : vector<8x128xf32>
    %c0_6 = arith.constant 0 : index
    %c0_7 = arith.constant 0 : index
    %8 = vector.load %arg5[%c0_6, %c0_7] : memref<8x128xf32, #tpu.memory_space<vmem>>, vector<8x128xf32>
    tpu.vector_store %arg5[%c0_6, %c0_7], %7 {strides = array<i32>} : memref<8x128xf32, #tpu.memory_space<vmem>>, vector<8x128xf32>,
    return
  }
  func.func @transform_0(%arg0: i32, %arg1: i32, %arg2: i32) -> (i32, i32) {
    %c0_i32 = arith.constant 0 : i32
    return %arg0, %arg2 : i32, i32
  }
  func.func @transform_1(%arg0: i32, %arg1: i32, %arg2: i32) -> (i32, i32) {
    %c0_i32 = arith.constant 0 : i32
    %c0_i32_0 = arith.constant 0 : i32
    return %c0_i32, %arg1 : i32, i32
  }
  func.func @transform_2(%arg0: i32, %arg1: i32, %arg2: i32) -> (i32, i32) {
    %c0_i32 = arith.constant 0 : i32
    return %arg0, %arg1 : i32, i32
  }
}

</mosaic_0001>

<bundles_post_ra>
// kernel: conv_sliced_wasserstein_base.1
= control target key start
LH: loop header
LB: loop body
LE: loop exit
PB: predicated region body
PF: predicated region fallthrough
CT: control target
= control target key end

     0   :  { %s1134_s1 = inlined_call_operand.vmem [shape: f32[1024,128], index: 1, kind: input, shape index: {}]   ;;  %s1135_s0 = inlined_call_operand.vmem [shape: f32[8,1024], index: 0, kind: input, shape index: {}]   ;;  %s1136_s2 = inlined_call_operand.vmem [shape: f32[8,128], index: 2, kind: output, shape index: {}]  }
   0x1   :  { %v32_v0 = vld [vmem:[%s1134_s1 + $0x80] sm:$0xff]  ;;  %v33_v1 = vld [vmem:[%s1134_s1 + $0x88] sm:$0xff]  ;;  %v34_v11 = vld [vmem:[%s1134_s1 + $0x90] sm:$0xff] }
   0x2   :  { %v64_v2 = vld [vmem:[%s1134_s1 + $0x180] sm:$0xff]  ;;  %v579_v3 = vpack.c.bf16 %v33_v1, %v32_v0  ;;  %v65_v4 = vld [vmem:[%s1134_s1 + $0x188] sm:$0xff]  ;;  %v35_v13 = vld [vmem:[%s1134_s1 + $0x98] sm:$0xff] }
   0x3   :  { %v16_v5 = vld [vmem:[%s1134_s1] sm:$0xff]  ;;  %v17_v6 = vld [vmem:[%s1134_s1 + $0x8] sm:$0xff]  ;;  %v611_v7 = vpack.c.bf16 %v65_v4, %v64_v2  ;;  %v66_v14 = vld [vmem:[%s1134_s1 + $0x190] sm:$0xff]  ;;  %v583_v16 = vpack.c.bf16 %v35_v13, %v34_v11 }
   0x4   :  { %v581_v8 = vpack.c.bf16 %v17_v6, %v16_v5  ;;  %v48_v9 = vld [vmem:[%s1134_s1 + $0x100] sm:$0xff]  ;;  %v49_v10 = vld [vmem:[%s1134_s1 + $0x108] sm:$0xff]  ;;  %580 = vmatprep.subr.bf16.mxu0 %v579_v3  ;;  %v67_v15 = vld [vmem:[%s1134_s1 + $0x198] sm:$0xff] }
   0x5   :  { %v613_v12 = vpack.c.bf16 %v49_v10, %v48_v9  ;;  %612 = vmatprep.subr.bf16.mxu1 %v611_v7  ;;  %v615_v17 = vpack.c.bf16 %v67_v15, %v66_v14  ;;  %v18_v18 = vld [vmem:[%s1134_s1 + $0x10] sm:$0xff]  ;;  %v19_v19 = vld [vmem:[%s1134_s1 + $0x18] sm:$0xff]  ;;  %v36_v23 = vld [vmem:[%s1134_s1 + $0xa0] sm:$0xff] }
   0x6   :  { %582 = vmatpush3.bf16.msra.mxu0 %v581_v8  ;;  %v50_v20 = vld [vmem:[%s1134_s1 + $0x110] sm:$0xff]  ;;  %v585_v21 = vpack.c.bf16 %v19_v19, %v18_v18  ;;  %v51_v22 = vld [vmem:[%s1134_s1 + $0x118] sm:$0xff]  ;;  %v37_v24 = vld [vmem:[%s1134_s1 + $0xa8] sm:$0xff] }
   0x7   :  { %614 = vmatpush3.bf16.msra.mxu1 %v613_v12  ;;  %584 = vmatprep.subr.bf16.mxu0 %v583_v16  ;;  %v617_v25 = vpack.c.bf16 %v51_v22, %v50_v20  ;;  %v587_v26 = vpack.c.bf16 %v37_v24, %v36_v23  ;;  %v68_v27 = vld [vmem:[%s1134_s1 + $0x1a0] sm:$0xff]  ;;  %v69_v28 = vld [vmem:[%s1134_s1 + $0x1a8] sm:$0xff]  ;;  %v38_v35 = vld [vmem:[%s1134_s1 + $0xb0] sm:$0xff] }
   0x8   :  { %616 = vmatprep.subr.bf16.mxu1 %v615_v17  ;;  %v20_v29 = vld [vmem:[%s1134_s1 + $0x20] sm:$0xff]  ;;  %v619_v30 = vpack.c.bf16 %v69_v28, %v68_v27  ;;  %v21_v31 = vld [vmem:[%s1134_s1 + $0x28] sm:$0xff]  ;;  %v39_v36 = vld [vmem:[%s1134_s1 + $0xb8] sm:$0xff] }
   0x9   :  { %v52_v32 = vld [vmem:[%s1134_s1 + $0x120] sm:$0xff]  ;;  %v53_v33 = vld [vmem:[%s1134_s1 + $0x128] sm:$0xff]  ;;  %v589_v34 = vpack.c.bf16 %v21_v31, %v20_v29  ;;  %v70_v37 = vld [vmem:[%s1134_s1 + $0x1b0] sm:$0xff]  ;;  %v591_v39 = vpack.c.bf16 %v39_v36, %v38_v35 }
   0xa   :  { %586 = vmatpush3.bf16.msra.mxu0 %v585_v21  ;;  %v621_v38 = vpack.c.bf16 %v53_v33, %v52_v32  ;;  %v71_v40 = vld [vmem:[%s1134_s1 + $0x1b8] sm:$0xff]  ;;  %v22_v41 = vld [vmem:[%s1134_s1 + $0x30] sm:$0xff]  ;;  %v40_v46 = vld [vmem:[%s1134_s1 + $0xc0] sm:$0xff] }
   0xb   :  { %618 = vmatpush3.bf16.msra.mxu1 %v617_v25  ;;  %588 = vmatprep.subr.bf16.mxu0 %v587_v26  ;;  %v23_v42 = vld [vmem:[%s1134_s1 + $0x38] sm:$0xff]  ;;  %v623_v43 = vpack.c.bf16 %v71_v40, %v70_v37  ;;  %v54_v44 = vld [vmem:[%s1134_s1 + $0x130] sm:$0xff]  ;;  %v41_v47 = vld [vmem:[%s1134_s1 + $0xc8] sm:$0xff] }
   0xc   :  { %620 = vmatprep.subr.bf16.mxu1 %v619_v30  ;;  %v55_v45 = vld [vmem:[%s1134_s1 + $0x138] sm:$0xff]  ;;  %v72_v48 = vld [vmem:[%s1134_s1 + $0x1c0] sm:$0xff]  ;;  %v73_v49 = vld [vmem:[%s1134_s1 + $0x1c8] sm:$0xff]  ;;  %v593_v50 = vpack.c.bf16 %v23_v42, %v22_v41  ;;  %v595_v52 = vpack.c.bf16 %v41_v47, %v40_v46 }
   0xd   :  { %v625_v51 = vpack.c.bf16 %v55_v45, %v54_v44  ;;  %v24_v53 = vld [vmem:[%s1134_s1 + $0x40] sm:$0xff]  ;;  %v25_v54 = vld [vmem:[%s1134_s1 + $0x48] sm:$0xff]  ;;  %v627_v56 = vpack.c.bf16 %v73_v49, %v72_v48  ;;  %v42_v58 = vld [vmem:[%s1134_s1 + $0xd0] sm:$0xff] }
   0xe   :  { %590 = vmatpush3.bf16.msra.mxu0 %v589_v34  ;;  %v56_v55 = vld [vmem:[%s1134_s1 + $0x140] sm:$0xff]  ;;  %v57_v57 = vld [vmem:[%s1134_s1 + $0x148] sm:$0xff]  ;;  %v43_v59 = vld [vmem:[%s1134_s1 + $0xd8] sm:$0xff]  ;;  %v597_v62 = vpack.c.bf16 %v25_v54, %v24_v53 }
   0xf   :  { %622 = vmatpush3.bf16.msra.mxu1 %v621_v38  ;;  %592 = vmatprep.subr.bf16.mxu0 %v591_v39  ;;  %v74_v60 = vld [vmem:[%s1134_s1 + $0x1d0] sm:$0xff]  ;;  %v75_v61 = vld [vmem:[%s1134_s1 + $0x1d8] sm:$0xff]  ;;  %v629_v63 = vpack.c.bf16 %v57_v57, %v56_v55  ;;  %v599_v0 = vpack.c.bf16 %v43_v59, %v42_v58  ;;  %v44_v6 = vld [vmem:[%s1134_s1 + $0xe0] sm:$0xff] }
  0x10   :  { %624 = vmatprep.subr.bf16.mxu1 %v623_v43  ;;  %v26_v1 = vld [vmem:[%s1134_s1 + $0x50] sm:$0xff]  ;;  %v27_v2 = vld [vmem:[%s1134_s1 + $0x58] sm:$0xff]  ;;  %v631_v4 = vpack.c.bf16 %v75_v61, %v74_v60  ;;  %v45_v7 = vld [vmem:[%s1134_s1 + $0xe8] sm:$0xff] }
  0x11   :  { %v58_v3 = vld [vmem:[%s1134_s1 + $0x150] sm:$0xff]  ;;  %v59_v5 = vld [vmem:[%s1134_s1 + $0x158] sm:$0xff]  ;;  %v76_v8 = vld [vmem:[%s1134_s1 + $0x1e0] sm:$0xff]  ;;  %v601_v10 = vpack.c.bf16 %v27_v2, %v26_v1  ;;  %v603_v14 = vpack.c.bf16 %v45_v7, %v44_v6 }
  0x12   :  { %594 = vmatpush3.bf16.msra.mxu0 %v593_v50  ;;  %v77_v9 = vld [vmem:[%s1134_s1 + $0x1e8] sm:$0xff]  ;;  %v28_v11 = vld [vmem:[%s1134_s1 + $0x60] sm:$0xff]  ;;  %v633_v13 = vpack.c.bf16 %v59_v5, %v58_v3  ;;  %v148_v17 = vld [vmem:[%s1135_s0 + $0x18] sm:$0xff] }
  0x13   :  { %626 = vmatpush3.bf16.msra.mxu1 %v625_v51  ;;  %596 = vmatprep.subr.bf16.mxu0 %v595_v52  ;;  %v29_v12 = vld [vmem:[%s1134_s1 + $0x68] sm:$0xff]  ;;  %v60_v15 = vld [vmem:[%s1134_s1 + $0x160] sm:$0xff]  ;;  %v635_v18 = vpack.c.bf16 %v77_v9, %v76_v8  ;;  %v46_v20 = vld [vmem:[%s1134_s1 + $0xf0] sm:$0xff] }
  0x14   :  { %628 = vmatprep.subr.bf16.mxu1 %v627_v56  ;;  %v146_v16 = vld [vmem:[%s1135_s0 + $0x8] sm:$0xff]  ;;  %v47_v21 = vld [vmem:[%s1134_s1 + $0xf8] sm:$0xff]  ;;  %v78_v22 = vld [vmem:[%s1134_s1 + $0x1f0] sm:$0xff]  ;;  %287 = vmatprep.mubr.f32.mxu1 %v148_v17  ;;  %v605_v24 = vpack.c.bf16 %v29_v12, %v28_v11 }
  0x15   :  { %v61_v19 = vld [vmem:[%s1134_s1 + $0x168] sm:$0xff]  ;;  %217 = vmatprep.mubr.f32.mxu0 %v146_v16  ;;  %v79_v23 = vld [vmem:[%s1134_s1 + $0x1f8] sm:$0xff]  ;;  %v607_v26 = vpack.c.bf16 %v47_v21, %v46_v20  ;;  %v30_v27 = vld [vmem:[%s1134_s1 + $0x70] sm:$0xff] }
  0x16   :  { %598 = vmatpush3.bf16.msra.mxu0 %v597_v62  ;;  %v637_v25 = vpack.c.bf16 %v61_v19, %v60_v15  ;;  %v31_v28 = vld [vmem:[%s1134_s1 + $0x78] sm:$0xff]  ;;  %v62_v29 = vld [vmem:[%s1134_s1 + $0x170] sm:$0xff]  ;;  %v639_v30 = vpack.c.bf16 %v79_v23, %v78_v22  ;;  %v96_v32 = vld [vmem:[%s1134_s1 + $0x280] sm:$0xff] }
  0x17   :  { %630 = vmatpush3.bf16.msra.mxu1 %v629_v63  ;;  %600 = vmatprep.subr.bf16.mxu0 %v599_v0  ;;  %v63_v31 = vld [vmem:[%s1134_s1 + $0x178] sm:$0xff]  ;;  %v97_v33 = vld [vmem:[%s1134_s1 + $0x288] sm:$0xff]  ;;  %v128_v34 = vld [vmem:[%s1134_s1 + $0x380] sm:$0xff]  ;;  %v609_v36 = vpack.c.bf16 %v31_v28, %v30_v27 }
  0x18   :  { %632 = vmatprep.subr.bf16.mxu1 %v631_v4  ;;  %v129_v35 = vld [vmem:[%s1134_s1 + $0x388] sm:$0xff]  ;;  %v641_v37 = vpack.c.bf16 %v63_v31, %v62_v29  ;;  %v643_v38 = vpack.c.bf16 %v97_v33, %v96_v32  ;;  %v80_v39 = vld [vmem:[%s1134_s1 + $0x200] sm:$0xff]  ;;  %v98_v44 = vld [vmem:[%s1134_s1 + $0x290] sm:$0xff] }
  0x19   :  { %v81_v40 = vld [vmem:[%s1134_s1 + $0x208] sm:$0xff]  ;;  %v112_v41 = vld [vmem:[%s1134_s1 + $0x300] sm:$0xff]  ;;  %v675_v42 = vpack.c.bf16 %v129_v35, %v128_v34  ;;  %v99_v45 = vld [vmem:[%s1134_s1 + $0x298] sm:$0xff] }
  0x1a   :  { %602 = vmatpush3.bf16.msra.mxu0 %v601_v10  ;;  %v113_v43 = vld [vmem:[%s1134_s1 + $0x308] sm:$0xff]  ;;  %v130_v46 = vld [vmem:[%s1134_s1 + $0x390] sm:$0xff]  ;;  %v131_v47 = vld [vmem:[%s1134_s1 + $0x398] sm:$0xff]  ;;  %v645_v50 = vpack.c.bf16 %v81_v40, %v80_v39  ;;  %v647_v52 = vpack.c.bf16 %v99_v45, %v98_v44 }
  0x1b   :  { %634 = vmatpush3.bf16.msra.mxu1 %v633_v13  ;;  %604 = vmatprep.subr.bf16.mxu0 %v603_v14  ;;  %v145_v48 = vld [vmem:[%s1135_s0] sm:$0xff]  ;;  %v147_v49 = vld [vmem:[%s1135_s0 + $0x10] sm:$0xff]  ;;  %v677_v51 = vpack.c.bf16 %v113_v43, %v112_v41  ;;  %v83_v54 = vld [vmem:[%s1134_s1 + $0x218] sm:$0xff]  ;;  %v679_v56 = vpack.c.bf16 %v131_v47, %v130_v46 }
  0x1c   :  { %636 = vmatprep.subr.bf16.mxu1 %v635_v18  ;;  %v82_v53 = vld [vmem:[%s1134_s1 + $0x210] sm:$0xff]  ;;  %v115_v57 = vld [vmem:[%s1134_s1 + $0x318] sm:$0xff]  ;;  %v100_v58 = vld [vmem:[%s1134_s1 + $0x2a0] sm:$0xff] }
  0x1d   :  { %v114_v55 = vld [vmem:[%s1134_s1 + $0x310] sm:$0xff]  ;;  %v101_v59 = vld [vmem:[%s1134_s1 + $0x2a8] sm:$0xff]  ;;  %v132_v60 = vld [vmem:[%s1134_s1 + $0x3a0] sm:$0xff]  ;;  %v649_v62 = vpack.c.bf16 %v83_v54, %v82_v53 }
  0x1e   :  { %606 = vmatpush3.bf16.msra.mxu0 %v605_v24  ;;  %v133_v61 = vld [vmem:[%s1134_s1 + $0x3a8] sm:$0xff]  ;;  %v681_v63 = vpack.c.bf16 %v115_v57, %v114_v55  ;;  %v651_v0 = vpack.c.bf16 %v101_v59, %v100_v58  ;;  %v84_v1 = vld [vmem:[%s1134_s1 + $0x220] sm:$0xff]  ;;  %v102_v6 = vld [vmem:[%s1134_s1 + $0x2b0] sm:$0xff] }
  0x1f   :  { %638 = vmatpush3.bf16.msra.mxu1 %v637_v25  ;;  %608 = vmatprep.subr.bf16.mxu0 %v607_v26  ;;  %v85_v2 = vld [vmem:[%s1134_s1 + $0x228] sm:$0xff]  ;;  %v116_v3 = vld [vmem:[%s1134_s1 + $0x320] sm:$0xff]  ;;  %v683_v4 = vpack.c.bf16 %v133_v61, %v132_v60  ;;  %v103_v7 = vld [vmem:[%s1134_s1 + $0x2b8] sm:$0xff] }
  0x20   :  { %640 = vmatprep.subr.bf16.mxu1 %v639_v30  ;;  %v117_v5 = vld [vmem:[%s1134_s1 + $0x328] sm:$0xff]  ;;  %v134_v8 = vld [vmem:[%s1134_s1 + $0x3b0] sm:$0xff]  ;;  %v135_v9 = vld [vmem:[%s1134_s1 + $0x3b8] sm:$0xff]  ;;  %v653_v10 = vpack.c.bf16 %v85_v2, %v84_v1  ;;  %v655_v12 = vpack.c.bf16 %v103_v7, %v102_v6 }
  0x21   :  { %v685_v11 = vpack.c.bf16 %v117_v5, %v116_v3  ;;  %v86_v13 = vld [vmem:[%s1134_s1 + $0x230] sm:$0xff]  ;;  %v87_v14 = vld [vmem:[%s1134_s1 + $0x238] sm:$0xff]  ;;  %v687_v16 = vpack.c.bf16 %v135_v9, %v134_v8  ;;  %v104_v18 = vld [vmem:[%s1134_s1 + $0x2c0] sm:$0xff] }
  0x22   :  { %610 = vmatpush3.bf16.msra.mxu0 %v609_v36  ;;  %v118_v15 = vld [vmem:[%s1134_s1 + $0x330] sm:$0xff]  ;;  %v119_v17 = vld [vmem:[%s1134_s1 + $0x338] sm:$0xff]  ;;  %v105_v19 = vld [vmem:[%s1134_s1 + $0x2c8] sm:$0xff]  ;;  %v657_v22 = vpack.c.bf16 %v87_v14, %v86_v13 }
  0x23   :  { %642 = vmatpush3.bf16.msra.mxu1 %v641_v37  ;;  %644 = vmatprep.subr.bf16.mxu0 %v643_v38  ;;  %v136_v20 = vld [vmem:[%s1134_s1 + $0x3c0] sm:$0xff]  ;;  %v137_v21 = vld [vmem:[%s1134_s1 + $0x3c8] sm:$0xff]  ;;  %v152_v24 = vld [vmem:[%s1135_s0 + $0x38] sm:$0xff]  ;;  %v689_v25 = vpack.c.bf16 %v119_v17, %v118_v15  ;;  %v659_v26 = vpack.c.bf16 %v105_v19, %v104_v18 }
  0x24   :  { %676 = vmatprep.subr.bf16.mxu1 %v675_v42  ;;  %v150_v23 = vld [vmem:[%s1135_s0 + $0x28] sm:$0xff]  ;;  %v88_v27 = vld [vmem:[%s1134_s1 + $0x240] sm:$0xff]  ;;  %v691_v30 = vpack.c.bf16 %v137_v21, %v136_v20  ;;  %v106_v32 = vld [vmem:[%s1134_s1 + $0x2d0] sm:$0xff] }
  0x25   :  { %218 = vmatmul.mubr.f32.vlgmr.msra.gmra.mrb[0].mxu0 %v145_v48  ;;  %v89_v28 = vld [vmem:[%s1134_s1 + $0x248] sm:$0xff]  ;;  %v120_v29 = vld [vmem:[%s1134_s1 + $0x340] sm:$0xff]  ;;  %v107_v33 = vld [vmem:[%s1134_s1 + $0x2d8] sm:$0xff] }
  0x26   :  { %288 = vmatmul.mubr.f32.vlgmr.msra.gmra.mrb[0].mxu1 %v147_v49  ;;  %646 = vmatpush3.bf16.msra.mxu0 %v645_v50  ;;  %v121_v31 = vld [vmem:[%s1134_s1 + $0x348] sm:$0xff]  ;;  %v138_v34 = vld [vmem:[%s1134_s1 + $0x3d0] sm:$0xff]  ;;  %v139_v35 = vld [vmem:[%s1134_s1 + $0x3d8] sm:$0xff]  ;;  %v661_v36 = vpack.c.bf16 %v89_v28, %v88_v27  ;;  %v663_v38 = vpack.c.bf16 %v107_v33, %v106_v32 }
  0x27   :  { %678 = vmatpush3.bf16.msra.mxu1 %v677_v51  ;;  %648 = vmatprep.subr.bf16.mxu0 %v647_v52  ;;  %v693_v37 = vpack.c.bf16 %v121_v31, %v120_v29  ;;  %v90_v39 = vld [vmem:[%s1134_s1 + $0x250] sm:$0xff]  ;;  %v91_v40 = vld [vmem:[%s1134_s1 + $0x258] sm:$0xff]  ;;  %v695_v42 = vpack.c.bf16 %v139_v35, %v138_v34  ;;  %v108_v44 = vld [vmem:[%s1134_s1 + $0x2e0] sm:$0xff] }
  0x28   :  { %680 = vmatprep.subr.bf16.mxu1 %v679_v56  ;;  %357 = vmatprep.mubr.f32.mxu0 %v150_v23  ;;  %v122_v41 = vld [vmem:[%s1134_s1 + $0x350] sm:$0xff]  ;;  %v123_v43 = vld [vmem:[%s1134_s1 + $0x358] sm:$0xff]  ;;  %v109_v45 = vld [vmem:[%s1134_s1 + $0x2e8] sm:$0xff]  ;;  %v665_v48 = vpack.c.bf16 %v91_v40, %v90_v39 }
  0x29   :  { %427 = vmatprep.mubr.f32.mxu1 %v152_v24  ;;  %v140_v46 = vld [vmem:[%s1134_s1 + $0x3e0] sm:$0xff]  ;;  %v141_v47 = vld [vmem:[%s1134_s1 + $0x3e8] sm:$0xff]  ;;  %v697_v49 = vpack.c.bf16 %v123_v43, %v122_v41  ;;  %v667_v50 = vpack.c.bf16 %v109_v45, %v108_v44  ;;  %v110_v56 = vld [vmem:[%s1134_s1 + $0x2f0] sm:$0xff] }
  0x2a   :  { %650 = vmatpush3.bf16.msra.mxu0 %v649_v62  ;;  %v92_v51 = vld [vmem:[%s1134_s1 + $0x260] sm:$0xff]  ;;  %v93_v52 = vld [vmem:[%s1134_s1 + $0x268] sm:$0xff]  ;;  %v699_v54 = vpack.c.bf16 %v141_v47, %v140_v46  ;;  %v111_v57 = vld [vmem:[%s1134_s1 + $0x2f8] sm:$0xff] }
  0x2b   :  { %682 = vmatpush3.bf16.msra.mxu1 %v681_v63  ;;  %652 = vmatprep.subr.bf16.mxu0 %v651_v0  ;;  %v124_v53 = vld [vmem:[%s1134_s1 + $0x360] sm:$0xff]  ;;  %v125_v55 = vld [vmem:[%s1134_s1 + $0x368] sm:$0xff]  ;;  %v142_v58 = vld [vmem:[%s1134_s1 + $0x3f0] sm:$0xff]  ;;  %v669_v60 = vpack.c.bf16 %v93_v52, %v92_v51  ;;  %v671_v62 = vpack.c.bf16 %v111_v57, %v110_v56 }
  0x2c   :  { %684 = vmatprep.subr.bf16.mxu1 %v683_v4  ;;  %v143_v59 = vld [vmem:[%s1134_s1 + $0x3f8] sm:$0xff]  ;;  %v701_v61 = vpack.c.bf16 %v125_v55, %v124_v53  ;;  %v94_v63 = vld [vmem:[%s1134_s1 + $0x270] sm:$0xff]  ;;  %v149_v6 = vld [vmem:[%s1135_s0 + $0x20] sm:$0xff] }
  0x2d   :  { %v95_v0 = vld [vmem:[%s1134_s1 + $0x278] sm:$0xff]  ;;  %v703_v1 = vpack.c.bf16 %v143_v59, %v142_v58  ;;  %v126_v2 = vld [vmem:[%s1134_s1 + $0x370] sm:$0xff] }
  0x2e   :  { %654 = vmatpush3.bf16.msra.mxu0 %v653_v10  ;;  %v127_v3 = vld [vmem:[%s1134_s1 + $0x378] sm:$0xff]  ;;  %v673_v4 = vpack.c.bf16 %v95_v0, %v94_v63  ;;  %v151_v7 = vld [vmem:[%s1135_s0 + $0x30] sm:$0xff] }
  0x2f   :  { %686 = vmatpush3.bf16.msra.mxu1 %v685_v11  ;;  %656 = vmatprep.subr.bf16.mxu0 %v655_v12  ;;  %v705_v5 = vpack.c.bf16 %v127_v3, %v126_v2 }
  0x30   :  { %688 = vmatprep.subr.bf16.mxu1 %v687_v16 }
  0x32   :  { %658 = vmatpush3.bf16.msra.mxu0 %v657_v22 }
  0x33   :  { %690 = vmatpush3.bf16.msra.mxu1 %v689_v25  ;;  %660 = vmatprep.subr.bf16.mxu0 %v659_v26 }
  0x34   :  { %692 = vmatprep.subr.bf16.mxu1 %v691_v30 }
  0x36   :  { %662 = vmatpush3.bf16.msra.mxu0 %v661_v36 }
  0x37   :  { %694 = vmatpush3.bf16.msra.mxu1 %v693_v37  ;;  %664 = vmatprep.subr.bf16.mxu0 %v663_v38 }
  0x38   :  { %696 = vmatprep.subr.bf16.mxu1 %v695_v42 }
  0x3a   :  { %666 = vmatpush3.bf16.msra.mxu0 %v665_v48 }
  0x3b   :  { %698 = vmatpush3.bf16.msra.mxu1 %v697_v49  ;;  %668 = vmatprep.subr.bf16.mxu0 %v667_v50 }
  0x3c   :  { %700 = vmatprep.subr.bf16.mxu1 %v699_v54 }
  0x3e   :  { %670 = vmatpush3.bf16.msra.mxu0 %v669_v60 }
  0x3f   :  { %702 = vmatpush3.bf16.msra.mxu1 %v701_v61  ;;  %672 = vmatprep.subr.bf16.mxu0 %v671_v62 }
  0x40   :  { %704 = vmatprep.subr.bf16.mxu1 %v703_v1 }
  0x42   :  { %674 = vmatpush3.bf16.msra.mxu0 %v673_v4 }
  0x43   :  { %706 = vmatpush3.bf16.msra.mxu1 %v705_v5 }
  0x45   :  { %358 = vmatmul.mubr.f32.vlgmr.msra.gmra.mrb[2].mxu0 %v149_v6 }
  0x46   :  { %428 = vmatmul.mubr.f32.vlgmr.msra.gmra.mrb[2].mxu1 %v151_v7 }
  0xf8   :  { %v471_v8 = vpop.f32.mrb[0].mxu0 }
  0xf9   :  { %v506_v9 = vpop.f32.mrb[0].mxu1  ;;  %v472_v10 = vpop.f32.mrb[1].mxu0 }
  0xfa   :  { %v473_v11 = vadd.f32 %v472_v10, %v471_v8  ;;  %v507_v12 = vpop.f32.mrb[1].mxu1 }
  0xfb   :  { %v508_v13 = vadd.f32 %v507_v12, %v506_v9 }
  0xfd   :  { %v290_v14 = vadd.f32 %v508_v13, %v473_v11 }
 0x118   :  { %v541_v15 = vpop.f32.mrb[2].mxu0 }
 0x119   :  { %v542_v16 = vpop.f32.mrb[3].mxu0  ;;  %v576_v17 = vpop.f32.mrb[2].mxu1 }
 0x11a   :  { %v543_v18 = vadd.f32 %v542_v16, %v541_v15  ;;  %v577_v19 = vpop.f32.mrb[3].mxu1 }
 0x11b   :  { %v578_v20 = vadd.f32 %v577_v19, %v576_v17 }
 0x11c   :  { %v360_v21 = vadd.f32 %v543_v18, %v290_v14 }
 0x11e   :  { %v430_v22 = vadd.f32 %v578_v20, %v360_v21 }
 0x120   :  { %434 = vst [vmem:[%s1136_s2] sm:$0xff] %v430_v22 }

</bundles_post_ra>
